<compile_context>
chip_gen: v6e
topology: v6e:2x2x1
jax: 0.10.0
libtpu: 0.0.40
codegen_flags: <defaults>
</compile_context>

<pallas_src>
import math

import jax
import jax.numpy as jnp
from jax import lax
from jax.experimental import pallas as pl
from jax.experimental.pallas import tpu as pltpu

SQRT_HALF = math.sqrt(0.5)
EPS = 1e-5          # InstanceNorm1d default eps
NEG_SLOPE = 0.2     # LeakyReLU(0.2)
LANE = 128


def _make_kernel(Cin, Ch, Cout, T, Tp, K, has_sc, use_bf16):
    """Per-batch-element kernel; activations are (C, Tp) with time on lanes."""
    pad = K // 2
    mm_dtype = jnp.bfloat16 if use_bf16 else jnp.float32
    padded = Tp != T
    inv_T = 1.0 / T

    def kernel(x_ref, aff_ref, c1w_ref, c1b_ref, c2w_ref, c2b_ref, *rest):
        if has_sc:
            scw_ref, out_ref = rest
        else:
            (out_ref,) = rest

        x = x_ref[...]                                       # (Cin, Tp) f32

        # ---- hoisted iota / boundary masks (computed once, reused by both
        #      convs; minimal set: only shifts that cross a boundary) --------
        t_idx = lax.broadcasted_iota(jnp.int32, (1, Tp), 1)
        valid_f = (t_idx < T).astype(jnp.float32) if padded else None
        tap_mask = {}
        for k in range(K):
            s = pad - k
            if s > 0:
                tap_mask[s] = (t_idx >= s).astype(jnp.float32)
            elif s < 0:
                tap_mask[s] = (t_idx < T + s).astype(jnp.float32)
            # s == 0: center tap never crosses a boundary -> no mask

        # ---- packed per-batch AdaIN affine params: [1+g1 | b1 | 1+g2 | b2] -
        aff = aff_ref[...]                                   # (2Cin+2Ch, 1)
        g1, b1 = aff[0:Cin], aff[Cin:2 * Cin]
        g2 = aff[2 * Cin:2 * Cin + Ch]
        b2 = aff[2 * Cin + Ch:2 * Cin + 2 * Ch]

        def adain(v, g, b):
            # Instance norm over the true T columns; two-pass variance.
            if padded:
                m = jnp.sum(v * valid_f, axis=1, keepdims=True) * inv_T
                d = (v - m) * valid_f
            else:
                m = jnp.mean(v, axis=1, keepdims=True)
                d = v - m
            var = jnp.sum(d * d, axis=1, keepdims=True) * inv_T
            return g * ((v - m) * lax.rsqrt(var + EPS)) + b   # g = 1 + gamma

        def lrelu(v):
            return jnp.where(v >= 0, v, NEG_SLOPE * v)

        def conv1d(v, w_ref, b):
            # "same" conv as ONE folded MXU matmul:
            #   stack[k*C + c, t] = v[c, t + k - pad]  (0 outside [0, T))
            #   y = W_fold @ stack,  W_fold[o, k*C + c] = w[o, c, k]
            rows = []
            for k in range(K):                               # static unroll
                s = pad - k
                row = v if s == 0 else pltpu.roll(v, shift=s % Tp, axis=1)
                if s in tap_mask:
                    row = row * tap_mask[s]
                rows.append(row)
            stack = jnp.concatenate(rows, axis=0).astype(mm_dtype)
            y = jnp.dot(w_ref[...], stack, preferred_element_type=jnp.float32)
            return y + b

        # Residual: norm1 -> actv -> conv1 -> norm2 -> actv -> conv2
        # (dropout_p = 0.0 -> Dropout is the identity)
        r = adain(x, g1, b1)
        r = lrelu(r)
        r = conv1d(r, c1w_ref, c1b_ref[...])
        r = adain(r, g2, b2)
        r = lrelu(r)
        r = conv1d(r, c2w_ref, c2b_ref[...])

        # Shortcut: learned 1x1 conv, or plain identity (no matmul at all).
        if has_sc:
            sc = jnp.dot(scw_ref[...], x.astype(mm_dtype),
                         preferred_element_type=jnp.float32)
        else:
            sc = x

        out_ref[...] = ((sc + r) * SQRT_HALF).astype(out_ref.dtype)

    return kernel


def _effective_conv_weight(params, name):
    """weight_norm fold: w_eff = g * v / ||v|| (per output channel).
    If no g is given we are at init, where g == ||v|| and w_eff == v."""
    w = params[name + "_w"]
    g = params.get(name + "_g")
    if g is None:
        return w
    norm = jnp.sqrt(jnp.sum(w * w, axis=(1, 2), keepdims=True))
    return w * (g.reshape(-1, 1, 1) / norm)


def _vmem_budget_bytes(Cin, Ch, Cout, Tp, K, has_sc, mm_bytes):
    """Explicit scoped-VMEM budget for the whole-slab-per-batch design."""
    f32 = 4
    io = 2 * (Cin + Cout) * Tp * f32                         # x/out, double-buffered
    weights = 2 * (Ch * K * Cin + Cout * K * Ch) * mm_bytes  # folded conv weights x2
    if has_sc:
        weights += 2 * Cout * Cin * mm_bytes
    # tiny (C,1) inputs pad to (8,128) tiles in VMEM
    small = 2 * (2 * (Cin + Ch) + Ch + Cout + 24) * 8 * LANE * f32
    # live intermediates: x (kept for shortcut), r, conv stack, matmul result
    live = (2 * Cin + 2 * Ch + 2 * Cout + K * max(Cin, Ch)) * Tp * f32
    est = (io + weights + small + live) * 3 // 2 + (2 << 20)
    return int(min(max(est, 32 << 20), 100 << 20))


def adain_resblk1d(x, s, params, kernel_size=3, use_bf16_matmul=True):
    """x: (B, Cin, T), s: (B, S)  ->  (B, Cout, T).  float32, NCL layout."""
    B, Cin, T = x.shape
    K = kernel_size
    Ch = params["conv1_w"].shape[0]
    Cout = params["conv2_w"].shape[0]
    has_sc = "sc_w" in params
    mm_dtype = jnp.bfloat16 if use_bf16_matmul else jnp.float32

    # Pad T up to a lane multiple -> lane-dense loads/stores end to end; the
    # kernel masks AdaIN stats / conv boundaries to the true T.
    Tp = ((T + LANE - 1) // LANE) * LANE
    xp = x if Tp == T else jnp.pad(x, ((0, 0), (0, 0), (0, Tp - T)))

    # ---- hoisted AdaIN affine params (depend only on s): one batched XLA
    #      matmul each, packed into a single per-batch (2Cin+2Ch, 1) input.
    h1 = s @ params["fc1_w"].T + params["fc1_b"]             # (B, 2*Cin)
    h2 = s @ params["fc2_w"].T + params["fc2_b"]             # (B, 2*Ch)
    aff = jnp.concatenate(
        [1.0 + h1[:, :Cin], h1[:, Cin:], 1.0 + h2[:, :Ch], h2[:, Ch:]],
        axis=1)[:, :, None]                                  # (B, 2Cin+2Ch, 1)

    # ---- conv weights folded for the single-matmul conv:
    #      W_fold[o, k*Cin + c] = w[o, c, k], stored in the MXU operand dtype.
    w1 = _effective_conv_weight(params, "conv1")             # (Ch, Cin, K)
    w2 = _effective_conv_weight(params, "conv2")             # (Cout, Ch, K)
    c1_w = jnp.transpose(w1, (0, 2, 1)).reshape(Ch, K * Cin).astype(mm_dtype)
    c2_w = jnp.transpose(w2, (0, 2, 1)).reshape(Cout, K * Ch).astype(mm_dtype)
    c1_b = params["conv1_b"][:, None]                        # (Ch, 1)
    c2_b = params["conv2_b"][:, None]                        # (Cout, 1)

    A = 2 * (Cin + Ch)
    in_specs = [
        pl.BlockSpec((None, Cin, Tp), lambda b: (b, 0, 0)),  # x (per batch)
        pl.BlockSpec((None, A, 1), lambda b: (b, 0, 0)),     # packed AdaIN affine
        pl.BlockSpec((Ch, K * Cin), lambda b: (0, 0)),       # conv1 W (folded)
        pl.BlockSpec((Ch, 1), lambda b: (0, 0)),             # conv1 b
        pl.BlockSpec((Cout, K * Ch), lambda b: (0, 0)),      # conv2 W (folded)
        pl.BlockSpec((Cout, 1), lambda b: (0, 0)),           # conv2 b
    ]
    args = [xp, aff, c1_w, c1_b, c2_w, c2_b]
    if has_sc:
        in_specs.append(pl.BlockSpec((Cout, Cin), lambda b: (0, 0)))
        args.append(params["sc_w"][:, :, 0].astype(mm_dtype))

    kernel = _make_kernel(Cin, Ch, Cout, T, Tp, K, has_sc, use_bf16_matmul)

    out = pl.pallas_call(
        kernel,
        out_shape=jax.ShapeDtypeStruct((B, Cout, Tp), jnp.float32),
        grid_spec=pltpu.PrefetchScalarGridSpec(
            num_scalar_prefetch=0,
            grid=(B,),
            in_specs=in_specs,
            out_specs=pl.BlockSpec((None, Cout, Tp), lambda b: (b, 0, 0)),
        ),
        compiler_params=pltpu.CompilerParams(
            dimension_semantics=("parallel",),
            vmem_limit_bytes=_vmem_budget_bytes(
                Cin, Ch, Cout, Tp, K, has_sc,
                2 if use_bf16_matmul else 4)),
    )(*args)

    return out if Tp == T else out[:, :, :T]


# ---------------------- pure-JAX reference (for checking) ----------------------
def reference_forward(x, s, params, kernel_size=3):
    K = kernel_size
    w1 = _effective_conv_weight(params, "conv1")
    w2 = _effective_conv_weight(params, "conv2")

    def conv1d(v, w, b, pad):
        out = lax.conv_general_dilated(
            v, w, window_strides=(1,), padding=[(pad, pad)],
            dimension_numbers=("NCH", "OIH", "NCH"),
            precision=lax.Precision.HIGHEST)
        return out + b[None, :, None]

    def adain(v, w, b):
        C = v.shape[1]
        h = s @ w.T + b
        gamma = h[:, :C][:, :, None]
        beta = h[:, C:][:, :, None]
        mean = v.mean(axis=2, keepdims=True)
        var = ((v - mean) ** 2).mean(axis=2, keepdims=True)
        vn = (v - mean) / jnp.sqrt(var + EPS)
        return (1.0 + gamma) * vn + beta

    def lrelu(v):
        return jnp.where(v >= 0, v, NEG_SLOPE * v)

    r = adain(x, params["fc1_w"], params["fc1_b"])
    r = lrelu(r)
    r = conv1d(r, w1, params["conv1_b"], K // 2)
    r = adain(r, params["fc2_w"], params["fc2_b"])
    r = lrelu(r)
    r = conv1d(r, w2, params["conv2_b"], K // 2)
    if "sc_w" in params:
        sc = lax.conv_general_dilated(
            x, params["sc_w"], window_strides=(1,), padding=[(0, 0)],
            dimension_numbers=("NCH", "OIH", "NCH"),
            precision=lax.Precision.HIGHEST)
    else:
        sc = x
    return (sc + r) * SQRT_HALF


# ------------------------------------ main ------------------------------------
if __name__ == "__main__":
    def make_case(case_idx, B, T, dim_in, dim_out, style_dim=64, K=3):
        dim_hidden = dim_out                                 # dim_hidden=None default
        key = jax.random.fold_in(jax.random.PRNGKey(0), case_idx)
        ks = jax.random.split(key, 11)

        def rnd(k, shape, scale=0.2):
            return scale * jax.random.normal(k, shape, dtype=jnp.float32)

        params = {
            # AdaIN1d fc layers: Linear(style_dim, 2*num_features)
            "fc1_w": rnd(ks[0], (2 * dim_in, style_dim)),
            "fc1_b": rnd(ks[1], (2 * dim_in,)),
            "fc2_w": rnd(ks[2], (2 * dim_hidden, style_dim)),
            "fc2_b": rnd(ks[3], (2 * dim_hidden,)),
            # weight_norm(Conv1d): at init effective weight == raw weight
            "conv1_w": rnd(ks[4], (dim_hidden, dim_in, K)),
            "conv1_b": rnd(ks[5], (dim_hidden,)),
            "conv2_w": rnd(ks[6], (dim_out, dim_hidden, K)),
            "conv2_b": rnd(ks[7], (dim_out,)),
        }
        if dim_in != dim_out:
            # learned shortcut: Conv1d(dim_in, dim_out, 1, bias=False)
            params["sc_w"] = rnd(ks[8], (dim_out, dim_in, 1))

        x = jax.random.normal(ks[9], (B, dim_in, T), dtype=jnp.float32)
        s = jax.random.normal(ks[10], (B, style_dim), dtype=jnp.float32)
        return x, s, params

    def run_case(case_idx, B, T, dim_in, dim_out, use_bf16, tol, K=3):
        x, s, params = make_case(case_idx, B, T, dim_in, dim_out, K=K)
        out = jax.block_until_ready(
            adain_resblk1d(x, s, params, kernel_size=K,
                           use_bf16_matmul=use_bf16))
        ref = reference_forward(x, s, params, kernel_size=K)
        assert out.shape == (B, dim_out, T), out.shape
        err = float(jnp.max(jnp.abs(out - ref)))
        assert err < tol, f"case {case_idx}: max abs error {err} (tol {tol})"

    # exact-f32 MXU path, tight tolerance
    run_case(0, B=2, T=16, dim_in=4, dim_out=8, use_bf16=False, tol=2e-4)   # learned 1x1 shortcut, ragged T (lane pad + mask path)
    run_case(1, B=2, T=128, dim_in=8, dim_out=8, use_bf16=False, tol=2e-4)  # identity shortcut, lane-aligned T
    # fast bf16-operand MXU path (f32 accumulation), looser tolerance
    run_case(2, B=2, T=128, dim_in=8, dim_out=8, use_bf16=True, tol=5e-2)
    run_case(3, B=2, T=16, dim_in=4, dim_out=8, use_bf16=True, tol=5e-2)
    print("KERNEL_OK")
</pallas_src>

<mosaic_0001>
module attributes {stable_mosaic.version = 11 : i64} {
  func.func @kernel(%arg0: i32, %arg1: memref<1x4x128xf32, #tpu.memory_space<vmem>>, %arg2: memref<1x24x1xf32, #tpu.memory_space<vmem>>, %arg3: memref<8x12xf32, #tpu.memory_space<vmem>>, %arg4: memref<8x1xf32, #tpu.memory_space<vmem>>, %arg5: memref<8x24xf32, #tpu.memory_space<vmem>>, %arg6: memref<8x1xf32, #tpu.memory_space<vmem>>, %arg7: memref<8x4xf32, #tpu.memory_space<vmem>>, %arg8: memref<1x8x128xf32, #tpu.memory_space<vmem>>) attributes {dimension_semantics = [#tpu.dimension_semantics<parallel>], iteration_bounds = array<i64: 2>, scalar_prefetch = 0 : i64, scratch_operands = 0 : i64, tpu.core_type = #tpu.core_type<tc>, window_params = [{transform_indices = @transform_0, window_bounds = array<i64: 1, 4, 128>}, {transform_indices = @transform_1, window_bounds = array<i64: 1, 24, 1>}, {pipeline_mode = #tpu.pipeline_mode<synchronous>, transform_indices = @transform_2, window_bounds = array<i64: 8, 12>}, {pipeline_mode = #tpu.pipeline_mode<synchronous>, transform_indices = @transform_3, window_bounds = array<i64: 8, 1>}, {pipeline_mode = #tpu.pipeline_mode<synchronous>, transform_indices = @transform_4, window_bounds = array<i64: 8, 24>}, {pipeline_mode = #tpu.pipeline_mode<synchronous>, transform_indices = @transform_5, window_bounds = array<i64: 8, 1>}, {pipeline_mode = #tpu.pipeline_mode<synchronous>, transform_indices = @transform_6, window_bounds = array<i64: 8, 4>}, {transform_indices = @transform_7, window_bounds = array<i64: 1, 8, 128>}]} {
    %c0 = arith.constant 0 : index
    %c0_0 = arith.constant 0 : index
    %c0_1 = arith.constant 0 : index
    %0 = vector.load %arg1[%c0, %c0_0, %c0_1] : memref<1x4x128xf32, #tpu.memory_space<vmem>>, vector<1x4x128xf32>
    %1 = vector.shape_cast %0 : vector<1x4x128xf32> to vector<4x128xf32>
    %2 = tpu.iota {dimensions = array<i32: 1>} : vector<1x128xi32>
    %c16_i32 = arith.constant 16 : i32
    %3 = vector.broadcast %c16_i32 : i32 to vector<1x128xi32>
    %4 = arith.cmpi slt, %2, %3 : vector<1x128xi32>
    %5 = arith.extui %4 : vector<1x128xi1> to vector<1x128xi32>
    %6 = arith.sitofp %5 : vector<1x128xi32> to vector<1x128xf32>
    %c1_i32 = arith.constant 1 : i32
    %7 = vector.broadcast %c1_i32 : i32 to vector<1x128xi32>
    %8 = arith.cmpi sge, %2, %7 : vector<1x128xi32>
    %9 = arith.extui %8 : vector<1x128xi1> to vector<1x128xi32>
    %10 = arith.sitofp %9 : vector<1x128xi32> to vector<1x128xf32>
    %c15_i32 = arith.constant 15 : i32
    %11 = vector.broadcast %c15_i32 : i32 to vector<1x128xi32>
    %12 = arith.cmpi slt, %2, %11 : vector<1x128xi32>
    %13 = arith.extui %12 : vector<1x128xi1> to vector<1x128xi32>
    %14 = arith.sitofp %13 : vector<1x128xi32> to vector<1x128xf32>
    %c0_2 = arith.constant 0 : index
    %c0_3 = arith.constant 0 : index
    %c0_4 = arith.constant 0 : index
    %15 = vector.load %arg2[%c0_2, %c0_3, %c0_4] : memref<1x24x1xf32, #tpu.memory_space<vmem>>, vector<1x24x1xf32>
    %16 = vector.shape_cast %15 : vector<1x24x1xf32> to vector<24x1xf32>
    %17 = vector.extract_strided_slice %16 {offsets = [0, 0], sizes = [4, 1], strides = [1, 1]} : vector<24x1xf32> to vector<4x1xf32>
    %18 = vector.extract_strided_slice %16 {offsets = [4, 0], sizes = [4, 1], strides = [1, 1]} : vector<24x1xf32> to vector<4x1xf32>
    %19 = vector.extract_strided_slice %16 {offsets = [8, 0], sizes = [8, 1], strides = [1, 1]} : vector<24x1xf32> to vector<8x1xf32>
    %20 = vector.extract_strided_slice %16 {offsets = [16, 0], sizes = [8, 1], strides = [1, 1]} : vector<24x1xf32> to vector<8x1xf32>
    %21 = vector.broadcast %6 : vector<1x128xf32> to vector<4x128xf32>
    %22 = arith.mulf %1, %21 : vector<4x128xf32>
    %cst = arith.constant dense<0.000000e+00> : vector<4xf32>
    %23 = vector.multi_reduction <add>, %22, %cst [1] : vector<4x128xf32> to vector<4xf32>
    %24 = vector.shape_cast %23 : vector<4xf32> to vector<4x1xf32>
    %cst_5 = arith.constant 6.250000e-02 : f32
    %25 = vector.broadcast %cst_5 : f32 to vector<4x1xf32>
    %26 = arith.mulf %24, %25 : vector<4x1xf32>
    %27 = vector.broadcast %26 : vector<4x1xf32> to vector<4x128xf32>
    %28 = arith.subf %1, %27 : vector<4x128xf32>
    %29 = vector.broadcast %6 : vector<1x128xf32> to vector<4x128xf32>
    %30 = arith.mulf %28, %29 : vector<4x128xf32>
    %31 = arith.mulf %30, %30 : vector<4x128xf32>
    %cst_6 = arith.constant dense<0.000000e+00> : vector<4xf32>
    %32 = vector.multi_reduction <add>, %31, %cst_6 [1] : vector<4x128xf32> to vector<4xf32>
    %33 = vector.shape_cast %32 : vector<4xf32> to vector<4x1xf32>
    %cst_7 = arith.constant 6.250000e-02 : f32
    %34 = vector.broadcast %cst_7 : f32 to vector<4x1xf32>
    %35 = arith.mulf %33, %34 : vector<4x1xf32>
    %36 = vector.broadcast %26 : vector<4x1xf32> to vector<4x128xf32>
    %37 = arith.subf %1, %36 : vector<4x128xf32>
    %cst_8 = arith.constant 9.99999974E-6 : f32
    %38 = vector.broadcast %cst_8 : f32 to vector<4x1xf32>
    %39 = arith.addf %35, %38 : vector<4x1xf32>
    %40 = math.rsqrt %39 : vector<4x1xf32>
    %41 = vector.broadcast %40 : vector<4x1xf32> to vector<4x128xf32>
    %42 = arith.mulf %37, %41 : vector<4x128xf32>
    %43 = vector.broadcast %17 : vector<4x1xf32> to vector<4x128xf32>
    %44 = arith.mulf %43, %42 : vector<4x128xf32>
    %45 = vector.broadcast %18 : vector<4x1xf32> to vector<4x128xf32>
    %46 = arith.addf %44, %45 : vector<4x128xf32>
    %cst_9 = arith.constant 0.000000e+00 : f32
    %47 = vector.broadcast %cst_9 : f32 to vector<4x128xf32>
    %48 = arith.cmpf oge, %46, %47 : vector<4x128xf32>
    %cst_10 = arith.constant 2.000000e-01 : f32
    %49 = vector.broadcast %cst_10 : f32 to vector<4x128xf32>
    %50 = arith.mulf %49, %46 : vector<4x128xf32>
    %51 = arith.select %48, %46, %50 : vector<4x128xi1>, vector<4x128xf32>
    %c0_11 = arith.constant 0 : index
    %c0_12 = arith.constant 0 : index
    %52 = vector.load %arg4[%c0_11, %c0_12] : memref<8x1xf32, #tpu.memory_space<vmem>>, vector<8x1xf32>
    %c1_i32_13 = arith.constant 1 : i32
    %53 = tpu.dynamic_rotate %51 by %c1_i32_13 dim 1 : vector<4x128xf32>, i32 -> vector<4x128xf32>
    %54 = vector.broadcast %10 : vector<1x128xf32> to vector<4x128xf32>
    %55 = arith.mulf %53, %54 : vector<4x128xf32>
    %c127_i32 = arith.constant 127 : i32
    %56 = tpu.dynamic_rotate %51 by %c127_i32 dim 1 : vector<4x128xf32>, i32 -> vector<4x128xf32>
    %57 = vector.broadcast %14 : vector<1x128xf32> to vector<4x128xf32>
    %58 = arith.mulf %56, %57 : vector<4x128xf32>
    %59 = tpu.concatenate %55, %51, %58 in 0 : vector<4x128xf32>, vector<4x128xf32>, vector<4x128xf32> -> vector<12x128xf32>
    %c0_14 = arith.constant 0 : index
    %c0_15 = arith.constant 0 : index
    %60 = vector.load %arg3[%c0_14, %c0_15] : memref<8x12xf32, #tpu.memory_space<vmem>>, vector<8x12xf32>
    %cst_16 = arith.constant dense<0.000000e+00> : vector<8x128xf32>
    %61 = tpu.matmul %60, %59, %cst_16 {dimension_numbers = #tpu.dot_dimension_numbers<[1], [0], [0], [1], [0, 0, 1, 1], [], []>} : vector<8x12xf32>, vector<12x128xf32>, vector<8x128xf32> -> vector<8x128xf32>
    %62 = vector.broadcast %52 : vector<8x1xf32> to vector<8x128xf32>
    %63 = arith.addf %61, %62 : vector<8x128xf32>
    %64 = vector.broadcast %6 : vector<1x128xf32> to vector<8x128xf32>
    %65 = arith.mulf %63, %64 : vector<8x128xf32>
    %cst_17 = arith.constant dense<0.000000e+00> : vector<8xf32>
    %66 = vector.multi_reduction <add>, %65, %cst_17 [1] : vector<8x128xf32> to vector<8xf32>
    %67 = vector.shape_cast %66 : vector<8xf32> to vector<8x1xf32>
    %cst_18 = arith.constant 6.250000e-02 : f32
    %68 = vector.broadcast %cst_18 : f32 to vector<8x1xf32>
    %69 = arith.mulf %67, %68 : vector<8x1xf32>
    %70 = vector.broadcast %69 : vector<8x1xf32> to vector<8x128xf32>
    %71 = arith.subf %63, %70 : vector<8x128xf32>
    %72 = vector.broadcast %6 : vector<1x128xf32> to vector<8x128xf32>
    %73 = arith.mulf %71, %72 : vector<8x128xf32>
    %74 = arith.mulf %73, %73 : vector<8x128xf32>
    %cst_19 = arith.constant dense<0.000000e+00> : vector<8xf32>
    %75 = vector.multi_reduction <add>, %74, %cst_19 [1] : vector<8x128xf32> to vector<8xf32>
    %76 = vector.shape_cast %75 : vector<8xf32> to vector<8x1xf32>
    %cst_20 = arith.constant 6.250000e-02 : f32
    %77 = vector.broadcast %cst_20 : f32 to vector<8x1xf32>
    %78 = arith.mulf %76, %77 : vector<8x1xf32>
    %79 = vector.broadcast %69 : vector<8x1xf32> to vector<8x128xf32>
    %80 = arith.subf %63, %79 : vector<8x128xf32>
    %cst_21 = arith.constant 9.99999974E-6 : f32
    %81 = vector.broadcast %cst_21 : f32 to vector<8x1xf32>
    %82 = arith.addf %78, %81 : vector<8x1xf32>
    %83 = math.rsqrt %82 : vector<8x1xf32>
    %84 = vector.broadcast %83 : vector<8x1xf32> to vector<8x128xf32>
    %85 = arith.mulf %80, %84 : vector<8x128xf32>
    %86 = vector.broadcast %19 : vector<8x1xf32> to vector<8x128xf32>
    %87 = arith.mulf %86, %85 : vector<8x128xf32>
    %88 = vector.broadcast %20 : vector<8x1xf32> to vector<8x128xf32>
    %89 = arith.addf %87, %88 : vector<8x128xf32>
    %cst_22 = arith.constant 0.000000e+00 : f32
    %90 = vector.broadcast %cst_22 : f32 to vector<8x128xf32>
    %91 = arith.cmpf oge, %89, %90 : vector<8x128xf32>
    %cst_23 = arith.constant 2.000000e-01 : f32
    %92 = vector.broadcast %cst_23 : f32 to vector<8x128xf32>
    %93 = arith.mulf %92, %89 : vector<8x128xf32>
    %94 = arith.select %91, %89, %93 : vector<8x128xi1>, vector<8x128xf32>
    %c0_24 = arith.constant 0 : index
    %c0_25 = arith.constant 0 : index
    %95 = vector.load %arg6[%c0_24, %c0_25] : memref<8x1xf32, #tpu.memory_space<vmem>>, vector<8x1xf32>
    %c1_i32_26 = arith.constant 1 : i32
    %96 = tpu.dynamic_rotate %94 by %c1_i32_26 dim 1 : vector<8x128xf32>, i32 -> vector<8x128xf32>
    %97 = vector.broadcast %10 : vector<1x128xf32> to vector<8x128xf32>
    %98 = arith.mulf %96, %97 : vector<8x128xf32>
    %c127_i32_27 = arith.constant 127 : i32
    %99 = tpu.dynamic_rotate %94 by %c127_i32_27 dim 1 : vector<8x128xf32>, i32 -> vector<8x128xf32>
    %100 = vector.broadcast %14 : vector<1x128xf32> to vector<8x128xf32>
    %101 = arith.mulf %99, %100 : vector<8x128xf32>
    %102 = tpu.concatenate %98, %94, %101 in 0 : vector<8x128xf32>, vector<8x128xf32>, vector<8x128xf32> -> vector<24x128xf32>
    %c0_28 = arith.constant 0 : index
    %c0_29 = arith.constant 0 : index
    %103 = vector.load %arg5[%c0_28, %c0_29] : memref<8x24xf32, #tpu.memory_space<vmem>>, vector<8x24xf32>
    %cst_30 = arith.constant dense<0.000000e+00> : vector<8x128xf32>
    %104 = tpu.matmul %103, %102, %cst_30 {dimension_numbers = #tpu.dot_dimension_numbers<[1], [0], [0], [1], [0, 0, 1, 1], [], []>} : vector<8x24xf32>, vector<24x128xf32>, vector<8x128xf32> -> vector<8x128xf32>
    %105 = vector.broadcast %95 : vector<8x1xf32> to vector<8x128xf32>
    %106 = arith.addf %104, %105 : vector<8x128xf32>
    %c0_31 = arith.constant 0 : index
    %c0_32 = arith.constant 0 : index
    %107 = vector.load %arg7[%c0_31, %c0_32] : memref<8x4xf32, #tpu.memory_space<vmem>>, vector<8x4xf32>
    %cst_33 = arith.constant dense<0.000000e+00> : vector<8x128xf32>
    %108 = tpu.matmul %107, %1, %cst_33 {dimension_numbers = #tpu.dot_dimension_numbers<[1], [0], [0], [1], [0, 0, 1, 1], [], []>} : vector<8x4xf32>, vector<4x128xf32>, vector<8x128xf32> -> vector<8x128xf32>
    %109 = arith.addf %108, %106 : vector<8x128xf32>
    %cst_34 = arith.constant 0.707106769 : f32
    %110 = vector.broadcast %cst_34 : f32 to vector<8x128xf32>
    %111 = arith.mulf %109, %110 : vector<8x128xf32>
    %c0_35 = arith.constant 0 : index
    %c0_36 = arith.constant 0 : index
    %c0_37 = arith.constant 0 : index
    %112 = vector.load %arg8[%c0_35, %c0_36, %c0_37] : memref<1x8x128xf32, #tpu.memory_space<vmem>>, vector<1x8x128xf32>
    %113 = vector.shape_cast %112 : vector<1x8x128xf32> to vector<8x128xf32>
    %114 = vector.shape_cast %111 : vector<8x128xf32> to vector<1x8x128xf32>
    tpu.vector_store %arg8[%c0_35, %c0_36, %c0_37], %114 {strides = array<i32>} : memref<1x8x128xf32, #tpu.memory_space<vmem>>, vector<1x8x128xf32>,
    return
  }
  func.func @transform_0(%arg0: i32) -> (i32, i32, i32) {
    %c0_i32 = arith.constant 0 : i32
    %c0_i32_0 = arith.constant 0 : i32
    %c0_i32_1 = arith.constant 0 : i32
    return %arg0, %c0_i32, %c0_i32_0 : i32, i32, i32
  }
  func.func @transform_1(%arg0: i32) -> (i32, i32, i32) {
    %c0_i32 = arith.constant 0 : i32
    %c0_i32_0 = arith.constant 0 : i32
    %c0_i32_1 = arith.constant 0 : i32
    return %arg0, %c0_i32, %c0_i32_0 : i32, i32, i32
  }
  func.func @transform_2(%arg0: i32) -> (i32, i32) {
    %c0_i32 = arith.constant 0 : i32
    %c0_i32_0 = arith.constant 0 : i32
    %c0_i32_1 = arith.constant 0 : i32
    return %c0_i32, %c0_i32_0 : i32, i32
  }
  func.func @transform_3(%arg0: i32) -> (i32, i32) {
    %c0_i32 = arith.constant 0 : i32
    %c0_i32_0 = arith.constant 0 : i32
    %c0_i32_1 = arith.constant 0 : i32
    return %c0_i32, %c0_i32_0 : i32, i32
  }
  func.func @transform_4(%arg0: i32) -> (i32, i32) {
    %c0_i32 = arith.constant 0 : i32
    %c0_i32_0 = arith.constant 0 : i32
    %c0_i32_1 = arith.constant 0 : i32
    return %c0_i32, %c0_i32_0 : i32, i32
  }
  func.func @transform_5(%arg0: i32) -> (i32, i32) {
    %c0_i32 = arith.constant 0 : i32
    %c0_i32_0 = arith.constant 0 : i32
    %c0_i32_1 = arith.constant 0 : i32
    return %c0_i32, %c0_i32_0 : i32, i32
  }
  func.func @transform_6(%arg0: i32) -> (i32, i32) {
    %c0_i32 = arith.constant 0 : i32
    %c0_i32_0 = arith.constant 0 : i32
    %c0_i32_1 = arith.constant 0 : i32
    return %c0_i32, %c0_i32_0 : i32, i32
  }
  func.func @transform_7(%arg0: i32) -> (i32, i32, i32) {
    %c0_i32 = arith.constant 0 : i32
    %c0_i32_0 = arith.constant 0 : i32
    %c0_i32_1 = arith.constant 0 : i32
    return %arg0, %c0_i32, %c0_i32_0 : i32, i32, i32
  }
}

</mosaic_0001>

<bundles_post_ra>
// kernel: tpu_custom_call.1
= control target key start
LH: loop header
LB: loop body
LE: loop exit
PB: predicated region body
PF: predicated region fallthrough
CT: control target
= control target key end

     0   :  { %12 = vsyncpa [#allocation3], 0  ;;  %s1059_s0 = inlined_call_operand.vmem [shape: f32[2,4,128], index: 0, kind: input, shape index: {}]   ;;  %s1060_s1 = inlined_call_operand.vmem [shape: f32[2,24,1], index: 1, kind: input, shape index: {}]   ;;  %s1061_s2 = inlined_call_operand.vmem [shape: f32[8,12], index: 2, kind: input, shape index: {}]   ;;  %s1062_s3 = inlined_call_operand.vmem [shape: f32[8,1], index: 3, kind: input, shape index: {}]   ;;  %s1063_s4 = inlined_call_operand.vmem [shape: f32[8,24], index: 4, kind: input, shape index: {}]   ;;  %s1064_s5 = inlined_call_operand.vmem [shape: f32[8,1], index: 5, kind: input, shape index: {}]   ;;  %s1065_s6 = inlined_call_operand.vmem [shape: f32[8,4], index: 6, kind: input, shape index: {}]   ;;  %s1066_s7 = inlined_call_operand.hbm [shape: f32[2,8,128], index: 7, kind: output, shape index: {}]  }
   0x1   :  { %14 = vsyncpa [#allocation3 + $0x1], 0  ;;  %s919_s24 = smov 0   ;;  %s921_s25 = smov 0  }
   0x2   :  { %s923_s26 = smov 0   ;;  %s925_s27 = smov 0  }
   0x3 LB: > { %s940_s28 = sadd.s32 4294967295, %s871_s27   ;;  %s711_s29 = sadd.s32 4294967294, %s871_s27   ;;  %s871_s27 = sphi %s925_s27, %s1072_s27   ;;  %s867_s26 = sphi %s923_s26, %s1071_s26   ;;  %s863_s25 = sphi %s921_s25, %s1070_s25   ;;  %s859_s24 = sphi %s919_s24, %s1069_s24  }
   0x4   : > { %s944_s30 = sadd.s32 1, %s871_s27   ;;  %s184_s8 = sadd.s32 1, %s867_s26 }
   0x5   : > { %s181_s9 = ssub.s32 %s871_s27, %s944_s30  ;;  %p194_p0 = scmp.ne.s32.totalorder %s867_s26, %s863_s25 }
   0x6   : > { %p182_p1 = scmp.eq.s32.totalorder %s181_s9, 0  ;;  %p195_p2 = scmp.eq.s32.totalorder %s940_s28, 1 }
   0x7   : > { %p200_p3 = scmp.ne.s32.totalorder %s863_s25, %s859_s24  ;;  %p201_p4 = scmp.eq.s32.totalorder %s711_s29, 1 }
   0x8   : > { %s955_s10 = scalar_select %p182_p1, %s867_s26, %s184_s8  }
   0x9   : > { %p957_p5 = por %p195_p2, %p194_p0  ;;  %p961_p6 = por %p201_p4, %p200_p3 }
   0xa   : > { %p714_p7 = scmp.ge.s32.totalorder %s871_s27, 1  ;;  %p249_p8 = scmp.lt.s32.totalorder %s871_s27, 3 }
   0xc   : > { %p250_p9 = pnand %p714_p7, %p249_p8 }
   0xd   : > { %p285_p10 = scmp.lt.s32.totalorder (!%p250_p9), %s940_s28, 1  ;;  %s876_s22 = smov (!%p250_p9), 1  }
   0xe   : > { %253 = sbr.rel (%p250_p9) target bundleno = 1302 (0x516), region = 48  ;;  %s877_s23 = smov (!%p250_p9), 127  }
   0xf   : > { %s282_s20 = sand.u32 (!%p250_p9), 1, %s863_s25   ;;  %s878_s16 = smov (!%p250_p9), [#allocation2]  }
  0x13   : > { %v295_v0 = vlaneseq  ;;  %v873_v1 = vmov 0.0   ;;  %s286_s13 = scalar_select %p285_p10, %s940_s28, 1  ;;  %vm310_vm1 = vcmask 1043456   ;;  %v874_v7 = vmov 0   ;;  %v337_v26 = vld [vmem:[%s1062_s3] sm:$0xff] }
  0x14   : > { %739 = vmatprep.subr.mxu0 %v873_v1  ;;  %746 = vmatprep.subr.mxu1 %v873_v1  ;;  %vm875_vm2 = vmmov 0   ;;  %v348_v35 = vld [vmem:[%s1061_s2] sm:$0xff]  ;;  %vm354_vm6 = vcmask 97280   ;;  %vm547_vm7 = vcmask 31744   ;;  %vm472_vm9 = vcmask 195584  }
  0x15   : > { %v296_v2 = vand.u32 127, %v295_v0  ;;  %s716_s14 = sshll.u32 %s286_s13, 2  ;;  %s760_s18 = smul.u32 24, %s286_s13  ;;  %805 = vset.pattern.permute.xlu1 %v874_v7  ;;  %806 = vset.pattern.permute.xlu0 %v874_v7  ;;  %v546_v56 = vld [vmem:[%s1065_s6] sm:$0xff] }
  0x16   : > { %s288_s17 = scalar_lea.vmem %s1059_s0, %s716_s14  ;;  %743 = vmatprep.mubr.msk.f32.mxu0 %vm875_vm2, %v873_v1  ;;  %752 = vmatprep.mubr.msk.f32.mxu1 %vm875_vm2, %v873_v1  ;;  %v459_v60 = vld [vmem:[%s1064_s5] sm:$0xff]  ;;  %s627_s14 = scalar_lea.sflag [#allocation3], %s282_s20 }
  0x17   : > { %vm297_vm0 = vcmp.lt.s32.totalorder %v296_v2, 16  ;;  %v294_v4 = vld [vmem:[%s288_s17] sm:$0xf]  ;;  %s982_s21 = scalar_lea.vmem %s1060_s1, %s760_s18  ;;  %vm300_vm4 = vcmp.ge.s32.totalorder %v296_v2, 1  ;;  %vm303_vm5 = vcmp.lt.s32.totalorder %v296_v2, 15  ;;  %s815_s17 = sshll.u32 %s878_s16, 4  ;;  %s816_s17 = int_to_ptr.vmem [resolvable:$false] %s815_s17 }
  0x18   : > { %v975_v3 = vsel %vm297_vm0, 1.0, %v873_v1  ;;  %v306_v8 = vld [vmem:[%s982_s21] sm:$0xff]  ;;  %v719_v27 = vsel %vm300_vm4, 1.0, %v873_v1  ;;  %v720_v28 = vsel %vm303_vm5, 1.0, %v873_v1  ;;  %v307_v41 = vld [vmem:[%s982_s21 + $0x8] sm:$0xff]  ;;  %v308_v47 = vld [vmem:[%s982_s21 + $0x10] sm:$0xff] }
  0x19   : > { %v309_v5 = vmul.f32 %v975_v3, %v294_v4  ;;  %327 = vperm.xlu1 %805, %v306_v8   ;;  %v466_v2 = vld [vmem:[%s1063_s4] sm:$0xff]  ;;  %s715_s21 = sshll.u32 %s282_s20, 3 }
  0x1b   : > { %v311_v6 = vsel %vm310_vm1, %v309_v5, 0.0 }
  0x1c   : > { %312 = vadd.xlane.f32.xlu0 %v311_v6 }
  0x94   : > { %v328_v18 = vpop.permute.xlu1 %327 }
  0x95   : > { %v331_v21 = vrot.slane %v328_v18, 4 }
  0xa5   : > { %v313_v9 = vpop.xlane.xlu0 %312 }
  0xa6   : > { %v314_v10 = vmul.f32 0.0625, %v313_v9 }
  0xa8   : > { %v315_v11 = vsub.f32 %v294_v4, %v314_v10 }
  0xaa   : > { %v316_v12 = vmul.f32 %v975_v3, %v315_v11 }
  0xac   : > { %v317_v13 = vmul.f32 %v316_v12, %v316_v12 }
  0xae   : > { %v318_v14 = vsel %vm310_vm1, %v317_v13, 0.0 }
  0xaf   : > { %319 = vadd.xlane.f32.xlu0 %v318_v14 }
 0x138   : > { %v320_v15 = vpop.xlane.xlu0 %319 }
 0x139   : > { %v321_v16 = vmul.f32 0.0625, %v320_v15 }
 0x13b   : > { %v322_v17 = vadd.f32 1e-05, %v321_v16 }
 0x13d   : > { %807 = vrsqrt.f32 %v322_v17 }
 0x14a   : > { %v808_v19 = vpop.eup %807 }
 0x14b   : > { %v324_v20 = vmul.f32 %v808_v19, %v315_v11 }
 0x14d   : > { %v330_v22 = vmul.f32 %v328_v18, %v324_v20 }
 0x14f   : > { %v333_v23 = vadd.f32 %v331_v21, %v330_v22 }
 0x151   : > { %vm334_vm3 = vcmp.ge.f32.partialorder %v333_v23, 0.0  ;;  %v335_v24 = vmul.f32 0.2, %v333_v23 }
 0x153   : > { %v336_v25 = vsel %vm334_vm3, %v333_v23, %v335_v24 }
 0x154   : > { %338 = vrot.lane.b32.xlu0 %v336_v25, %s876_s22  ;;  %341 = vrot.lane.b32.xlu1 %v336_v25, %s877_s23  ;;  %v345_v31 = vrot.slane %v336_v25, 4 }
 0x158   : > { %351 = vperm.xlu1 %805, %v337_v26  }
 0x1c6   : > { %v339_v29 = vpop.permute.xlu0 %338  ;;  %v342_v30 = vpop.permute.xlu1 %341 }
 0x1c7   : > { %v340_v32 = vmul.f32 %v719_v27, %v339_v29  ;;  %v343_v33 = vmul.f32 %v720_v28, %v342_v30 }
 0x1c9   : > { %740 = vmatpush3.msk.msra.mxu0 %vm310_vm1, %v343_v33  ;;  %v347_v34 = vsel %vm310_vm1, %v340_v32, %v345_v31 }
 0x1ca   : > { %741 = vmatprep.subr.mxu0 %v873_v1 }
 0x1cb   : > { %742 = vmatpush3.msra.mxu0 %v347_v34 }
 0x1cc   : > { %744 = vmatmul.mubr.msk.f32.vlgmr.msra.gmra.mxu0 %vm354_vm6, %v348_v35  ;;  %755 = vmatprep.subr.mxu0 %v873_v1 }
 0x1cd   : > { %756 = vmatpush3.msk.msra.mxu0 %vm310_vm1, %v294_v4  ;;  %757 = vmatprep.mubr.msk.f32.mxu0 %vm875_vm2, %v873_v1 }
 0x1d0   : > { %758 = vmatmul.mubr.msk.f32.vlgmr.msra.gmra.mxu0 %vm547_vm7, %v546_v56 }
 0x1d3   : > { %v352_v36 = vpop.permute.xlu1 %351 }
 0x28c   : > { %v427_v37 = vpop.f32.mrf.mxu0 }
 0x28d   : > { %v428_v38 = vadd.f32 %v427_v37, %v352_v36 }
 0x28e   : > { %v745_v39 = vpop.f32.mrf.mxu0 }
 0x28f   : > { %v431_v40 = vmul.f32 %v975_v3, %v428_v38 }
 0x291   : > { %432 = vadd.xlane.f32.xlu1 %v431_v40 }
 0x2a2   : > { %446 = vperm.xlu1 %805, %v307_v41  }
 0x31a   : > { %v433_v42 = vpop.xlane.xlu1 %432 }
 0x31b   : > { %v434_v43 = vmul.f32 0.0625, %v433_v42 }
 0x31d   : > { %v435_v44 = vsub.f32 %v428_v38, %v434_v43 }
 0x31e   : > { %v447_v53 = vpop.permute.xlu1 %446 }
 0x31f   : > { %v436_v45 = vmul.f32 %v975_v3, %v435_v44  ;;  %v620_v3 = vpop.f32.mrf.mxu0 }
 0x321   : > { %v437_v46 = vmul.f32 %v436_v45, %v436_v45  ;;  %v759_v4 = vpop.f32.mrf.mxu0 }
 0x323   : > { %438 = vadd.xlane.f32.xlu0 %v437_v46 }
 0x339   : > { %452 = vperm.xlu0 %806, %v308_v47  }
 0x3ac   : > { %v439_v48 = vpop.xlane.xlu0 %438 }
 0x3ad   : > { %v440_v49 = vmul.f32 0.0625, %v439_v48 }
 0x3af   : > { %v441_v50 = vadd.f32 1e-05, %v440_v49 }
 0x3b1   : > { %809 = vrsqrt.f32 %v441_v50 }
 0x3b4   : > { %v453_v54 = vpop.permute.xlu0 %452 }
 0x3be   : > { %v810_v51 = vpop.eup %809 }
 0x3bf   : > { %v443_v52 = vmul.f32 %v810_v51, %v435_v44 }
 0x3c1   : > { %v449_v55 = vmul.f32 %v447_v53, %v443_v52 }
 0x3c3   : > { %v455_v57 = vadd.f32 %v453_v54, %v449_v55 }
 0x3c5   : > { %v457_v58 = vmul.f32 0.2, %v455_v57  ;;  %vm456_vm8 = vcmp.ge.f32.partialorder %v455_v57, 0.0 }
 0x3c7   : > { %v458_v59 = vsel %vm456_vm8, %v455_v57, %v457_v58 }
 0x3c8   : > { %463 = vrot.lane.b32.xlu1 %v458_v59, %s877_s23  ;;  %s284_s23 = scalar_lea.vmem [#allocation2], %s715_s21 }
 0x3c9   : > { %s640_s29 = sshll.u32 %s284_s23, 4  ;;  %s641_s29 = int_to_ptr.vmem [resolvable:$true] %s640_s29 }
 0x3ca   : > { %s811_s15 = scalar_lea.vmem %s641_s29, 128  ;;  %p818_p0 = scmp.lt.s32.totalorder %s641_s29, %s816_s17 }
 0x3cb   : > { %p812_p11 = scmp.ne.s32.totalorder %s641_s29, %s811_s15 }
 0x3cc   : > { %460 = vrot.lane.b32.xlu1 %v458_v59, %s876_s22  ;;  %s727_s22 = sshll.u32 %s940_s28, 7  ;;  %s817_s28 = scalar_lea.vmem %s816_s17, 256 }
 0x3cd   : > { %s638_s13 = scalar_lea.hbm %s1066_s7, %s727_s22  ;;  %p813_p12 = pnand %p812_p11, %p957_p5 }
 0x3ce   : > { %p819_p1 = scmp.lt.s32.totalorder %s817_s28, %s811_s15 }
 0x3cf   : > { %p814_p13 = pneg %p813_p12 }
 0x3d0   : > { %469 = vperm.xlu1 %805, %v459_v60   ;;  %p820_p2 = por %p819_p1, %p818_p0 }
 0x3d2   : > { %p821_p3 = pnand %p820_p2, %p814_p13 }
 0x43a   : > { %v464_v61 = vpop.permute.xlu1 %463 }
 0x43b   : > { %v465_v62 = vmul.f32 %v720_v28, %v464_v61 }
 0x43d   : > { %747 = vmatpush3.msra.mxu1 %v465_v62 }
 0x43e   : > { %748 = vmatprep.subr.mxu1 %v873_v1  ;;  %v461_v63 = vpop.permute.xlu1 %460 }
 0x43f   : > { %v462_v0 = vmul.f32 %v719_v27, %v461_v63  ;;  %749 = vmatpush3.msra.mxu1 %v458_v59 }
 0x440   : > { %750 = vmatprep.subr.mxu1 %v873_v1 }
 0x441   : > { %751 = vmatpush3.msra.mxu1 %v462_v0 }
 0x442   : > { %753 = vmatmul.mubr.msk.f32.vlgmr.msra.gmra.mxu1 %vm472_vm9, %v466_v2 }
 0x44b   : > { %v470_v5 = vpop.permute.xlu1 %469 }
 0x502   : > { %v542_v6 = vpop.f32.mrf.mxu1 }
 0x503   : > { %v543_v7 = vadd.f32 %v542_v6, %v470_v5 }
 0x504   : > { %v754_v8 = vpop.f32.mrf.mxu1 }
 0x505   : > { %v621_v9 = vadd.f32 %v620_v3, %v543_v7 }
 0x507   : > { %v624_v10 = vmul.f32 0.70710677, %v621_v9 }
 0x509   : > { %625 = vst [vmem:[%s284_s23] sm:$0xff] %v624_v10 }
 0x50a   : > { %824 = shalt.err (!%p821_p3)
}
 0x50b   : > { %s825_s18 = scalar_lea.hbm %s638_s13, 128  ;;  %s829_s21 = scalar_lea.hbm %s1066_s7, 256 }
 0x50c   : > { %p826_p4 = scmp.ne.s32.totalorder %s638_s13, %s825_s18  ;;  %p830_p9 = scmp.lt.s32.totalorder %s638_s13, %s1066_s7 }
 0x50d   : > { %p831_p10 = scmp.lt.s32.totalorder %s829_s21, %s825_s18 }
 0x50e   : > { %p827_p7 = pnand %p826_p4, %p957_p5 }
 0x50f   : > { %p832_p11 = por %p831_p10, %p830_p9 }
 0x510   : > { %p828_p8 = pneg %p827_p7 }
 0x512   : > { %p833_p12 = pnand %p832_p11, %p828_p8 }
 0x514   : > { %836 = shalt.err (!%p833_p12)
}
 0x515   : > { %761 = dma.vmem_to_hbm [thread:$0]  (%p957_p5), %s641_s29, 128, %s638_s13, %s627_s14  }
 0x516 PF: > { %p767_p13 = scmp.ge.s32.totalorder %s871_s27, 2  ;;  %s652_s8 = sand.u32 1, %s859_s24  }
 0x517   : > { %s653_s9 = scalar_lea.sflag [#allocation3], %s652_s8 }
 0x518   : > { %p764_p0 = pnand %p767_p13, %p961_p6 }
 0x51a   : > { %p765_p1 = pneg %p764_p0 }
 0x51c   : > { %854 = dma.done.wait (%p765_p1), %s653_s9, 128  }
 0x51d   : > { %856 = vsyncadd (%p765_p1), %s653_s9, 4294967168  ;;  %p17_p2 = scmp.ge.s32.totalorder %s944_s30, 4   ;;  %s1069_s24 = smov %s863_s25 }
 0x51e   : > { %s1070_s25 = smov %s867_s26  ;;  %s1071_s26 = smov %s955_s10 }
 0x51f   : > { %s1072_s27 = smov %s944_s30  ;;  %19 = sbr.rel (!%p17_p2) target bundleno = 3 (0x3), region = 86 }
 0x524   :  { %658 = vsyncpa [#allocation3], 1 }
 0x525   :  { %660 = vsyncpa [#allocation3 + $0x1], 1 }

</bundles_post_ra>
